<compile_context>
chip_gen: v7x
topology: tpu7x:2x2x1
jax: 0.10.0
libtpu: 0.0.40
codegen_flags: <defaults>
</compile_context>

<pallas_src>
import functools

import jax
import jax.numpy as jnp
from jax.experimental import pallas as pl
from jax.experimental.pallas import tpu as pltpu


def _round_up(x, m):
    return ((x + m - 1) // m) * m


def _cdiv(a, b):
    return (a + b - 1) // b


def _vmem_capacity_bytes():
    """Physical per-core VMEM (128 MiB v5e/v6e, 64 MiB v7x); conservative fallback."""
    try:
        cap = getattr(pltpu.get_tpu_info(), "vmem_capacity_bytes", None)
        if cap:
            return int(cap)
    except Exception:
        pass
    return 64 * 1024 * 1024


def _maybe_buffered_spec(block_shape, index_map, n_buf):
    """Input BlockSpec with n_buf-deep pipelining when supported, else default (2)."""
    if n_buf > 2:
        try:
            return pl.BlockSpec(block_shape, index_map,
                                pipeline_mode=pl.Buffered(n_buf))
        except Exception:
            pass
    return pl.BlockSpec(block_shape, index_map)


# ---------------------------------------------------------------------------
# Phase 1: streamed Gram accumulation over the feature axis.
# ---------------------------------------------------------------------------
def _cosine_gram_kernel(fs_ref, ft_ref, os_ref, ot_ref, s_acc, t_acc, *,
                        d_total, tile_d, k_per_core, need_mask):
    c = pl.program_id(0)          # core / D-range split ("parallel")
    k = pl.program_id(1)          # D tile within this core's range ("arbitrary")

    # ---- init accumulators at the start of each core's reduction ----
    @pl.when(k == 0)
    def _init():
        s_acc[...] = jnp.zeros_like(s_acc)
        t_acc[...] = jnp.zeros_like(t_acc)

    fs = fs_ref[...]
    ft = ft_ref[...]

    if need_mask:
        # Zero the ragged tail of the last D tile (and fully zero the clamped
        # duplicate tile a core may see when the tile count is odd): the
        # unfilled region of a partial DMA window is garbage and must not
        # reach the MXU.  Static no-op when D divides evenly.
        start = (c * k_per_core + k) * tile_d
        valid = d_total - start                                  # traced scalar
        col = jax.lax.broadcasted_iota(jnp.int32, fs.shape, 1)
        keep = col < valid
        fs = jnp.where(keep, fs, jnp.zeros_like(fs))
        ft = jnp.where(keep, ft, jnp.zeros_like(ft))

    # ---- accumulate raw Gram matrices for this D tile (MXU, f32 accumulate) --
    dn = (((1,), (1,)), ((), ()))   # contract the shared feature axis (A @ A^T)
    s_acc[...] += jax.lax.dot_general(
        fs, fs, dimension_numbers=dn, preferred_element_type=jnp.float32)
    t_acc[...] += jax.lax.dot_general(
        ft, ft, dimension_numbers=dn, preferred_element_type=jnp.float32)

    # ---- emit this core's partial Grams on its last reduction step ----
    @pl.when(k == pl.num_programs(1) - 1)
    def _store():
        os_ref[0] = s_acc[...]
        ot_ref[0] = t_acc[...]


# ---------------------------------------------------------------------------
# Phase 2: one-shot epilogue — sum partials, normalize by the diagonal, reduce.
# ---------------------------------------------------------------------------
def _cosine_epilogue_kernel(s_parts_ref, t_parts_ref, o_ref):
    n_parts = s_parts_ref.shape[0]
    s = s_parts_ref[0]
    t = t_parts_ref[0]
    for c in range(1, n_parts):          # static unroll (n_parts <= 2)
        s = s + s_parts_ref[c]
        t = t + t_parts_ref[c]

    bsz = s.shape[0]
    eps = jnp.float32(1e-12)             # torch F.normalize default eps
    rows = jax.lax.broadcasted_iota(jnp.int32, (bsz, bsz), 0)
    cols = jax.lax.broadcasted_iota(jnp.int32, (bsz, bsz), 1)
    eye = rows == cols
    zero = jnp.zeros_like(s)

    # ||f_i||^2 lives on the Gram diagonal; extract it as a column and a row.
    s_row = jnp.sum(jnp.where(eye, s, zero), axis=1, keepdims=True)   # (B, 1)
    s_col = jnp.sum(jnp.where(eye, s, zero), axis=0, keepdims=True)   # (1, B)
    t_row = jnp.sum(jnp.where(eye, t, zero), axis=1, keepdims=True)
    t_col = jnp.sum(jnp.where(eye, t, zero), axis=0, keepdims=True)

    # Exact reciprocal (approx=False) to stay within the tight self-test tol.
    inv_s_r = pl.reciprocal(jnp.maximum(jnp.sqrt(s_row), eps))
    inv_s_c = pl.reciprocal(jnp.maximum(jnp.sqrt(s_col), eps))
    inv_t_r = pl.reciprocal(jnp.maximum(jnp.sqrt(t_row), eps))
    inv_t_c = pl.reciprocal(jnp.maximum(jnp.sqrt(t_col), eps))

    g_s = s * inv_s_r * inv_s_c
    g_t = t * inv_t_r * inv_t_c
    diff = g_t - g_s
    o_ref[0, 0] = jnp.sum(diff * diff) * jnp.float32(1.0 / (bsz * bsz))


# ---------------------------------------------------------------------------
# Wrapper
# ---------------------------------------------------------------------------
def cosine_loss(g_s, g_t, *, tile_d=None, num_cores=None):
    """Pallas TPU implementation of distiller_zoo.COS.Cosine forward.

    g_s, g_t: arrays with leading batch dim (e.g. NCHW feature maps).
    Returns: float32 array of shape (1,), matching the PyTorch module.
    """
    bsz = g_s.shape[0]
    # Flatten each example to a row vector (B, D).  Keep native dtype (bf16
    # stays bf16 in HBM — halves traffic; MXU accumulation is f32).
    f_s = g_s.reshape(bsz, -1)
    f_t = g_t.reshape(bsz, -1)
    assert f_s.shape == f_t.shape, "student/teacher features must match after flatten"
    B, D = f_s.shape
    itemsize = jnp.dtype(f_s.dtype).itemsize

    # ---- generation-aware VMEM budget --------------------------------------
    vmem_cap = _vmem_capacity_bytes()
    vmem_limit = min(vmem_cap * 3 // 4, vmem_cap - (4 << 20))   # 96 MiB on 128-MiB parts, 48 MiB on v7x
    b_sub, b_lane = _round_up(B, 8), _round_up(B, 128)
    acc_bytes = 2 * b_sub * b_lane * 4            # two (B,B) f32 accumulators
    out_bytes = 2 * 2 * b_sub * b_lane * 4        # two double-buffered (1,B,B) f32 out blocks
    headroom = 4 * 1024 * 1024                    # compiler internal scratch, slack
    win_rows = _round_up(B, 8)

    if tile_d is None:
        # 2 inputs x up to 3 buffers (+2 windows of slack for any internal
        # operand copies) of (B, tile_d) must fit in the remaining budget.
        # Cap each window at 16 MiB: beyond that the roofline fraction plateaus.
        budget = vmem_limit - acc_bytes - out_bytes - headroom
        n_windows = 2 * 3 + 2
        per_window = 128 * win_rows * itemsize
        if budget > 0:
            per_window = max(per_window, min(budget // n_windows, 16 * 1024 * 1024))
        cap_cols = max(128, (per_window // (win_rows * itemsize)) // 128 * 128)
        tile_d = min(_round_up(D, 128), cap_cols)
    else:
        tile_d = max(128, _round_up(int(tile_d), 128))

    if tile_d >= D:
        tile_d = D        # single full-width tile (block dim == full array dim is legal)

    n_k = _cdiv(D, tile_d)

    # Leading "parallel" grid axis: splits the D reduction across TensorCores
    # (~2x DMA/MXU throughput on multi-core chips such as v7x; on single-core
    # chips it is a sequential loop with a negligible partial-Gram writeback).
    if num_cores is None:
        num_cores = 2 if n_k >= 2 else 1
    n_cores = max(1, min(int(num_cores), n_k))
    k_per_core = _cdiv(n_k, n_cores)
    n_buf = 3 if k_per_core >= 3 else 2
    need_mask = (n_cores * k_per_core * tile_d != D)

    win_bytes = win_rows * tile_d * itemsize
    actual_need = (2 * n_buf + 2) * win_bytes + acc_bytes + out_bytes + headroom
    vmem_limit_bytes = int(min(vmem_cap, max(vmem_limit, actual_need)))

    def feature_index_map(c, k):
        t = c * k_per_core + k
        if n_cores * k_per_core > n_k:     # clamp the (fully masked) overflow tile
            t = jnp.minimum(t, n_k - 1)
        return (0, t)

    kernel = functools.partial(
        _cosine_gram_kernel, d_total=D, tile_d=tile_d,
        k_per_core=k_per_core, need_mask=need_mask)

    s_parts, t_parts = pl.pallas_call(
        kernel,
        out_shape=(jax.ShapeDtypeStruct((n_cores, B, B), jnp.float32),
                   jax.ShapeDtypeStruct((n_cores, B, B), jnp.float32)),
        grid_spec=pltpu.PrefetchScalarGridSpec(
            num_scalar_prefetch=0,
            grid=(n_cores, k_per_core),
            in_specs=[
                _maybe_buffered_spec((B, tile_d), feature_index_map, n_buf),
                _maybe_buffered_spec((B, tile_d), feature_index_map, n_buf),
            ],
            out_specs=[
                pl.BlockSpec((1, B, B), lambda c, k: (c, 0, 0)),
                pl.BlockSpec((1, B, B), lambda c, k: (c, 0, 0)),
            ],
            scratch_shapes=[
                pltpu.VMEM((B, B), jnp.float32),   # student Gram accumulator
                pltpu.VMEM((B, B), jnp.float32),   # teacher Gram accumulator
            ],
        ),
        compiler_params=pltpu.CompilerParams(
            dimension_semantics=("parallel", "arbitrary"),
            vmem_limit_bytes=vmem_limit_bytes,
        ),
    )(f_s, f_t)

    # Phase 2: tiny one-shot epilogue (sum partials, normalize, reduce).
    loss = pl.pallas_call(
        _cosine_epilogue_kernel,
        out_shape=jax.ShapeDtypeStruct((1, 1), jnp.float32),
        compiler_params=pltpu.CompilerParams(vmem_limit_bytes=vmem_limit_bytes),
    )(s_parts, t_parts)

    # PyTorch returns .view(-1, 1).sum(0) -> shape (1,)
    return loss.reshape(1)


def _reference_loss(g_s, g_t):
    """Pure-JAX reference for correctness check."""
    bsz = g_s.shape[0]
    f_s = g_s.reshape(bsz, -1).astype(jnp.float32)
    f_t = g_t.reshape(bsz, -1).astype(jnp.float32)
    f_s = f_s / jnp.maximum(jnp.linalg.norm(f_s, axis=1, keepdims=True), 1e-12)
    f_t = f_t / jnp.maximum(jnp.linalg.norm(f_t, axis=1, keepdims=True), 1e-12)
    gs = f_s @ f_s.T
    gt = f_t @ f_t.T
    d = gt - gs
    return (jnp.sum(d * d) / (bsz * bsz)).reshape(1)


if __name__ == "__main__":
    key = jax.random.PRNGKey(0)
    k1, k2, k3, k4 = jax.random.split(key, 4)

    # Case 1: small NCHW feature maps, single full-width tile (D = 1024).
    x_s = jax.random.normal(k1, (2, 4, 16, 16), dtype=jnp.float32)
    x_t = jax.random.normal(k2, (2, 4, 16, 16), dtype=jnp.float32)
    loss = cosine_loss(x_s, x_t)
    jax.block_until_ready(loss)
    ref = _reference_loss(x_s, x_t)
    assert loss.shape == (1,), f"unexpected shape {loss.shape}"
    assert jnp.allclose(loss, ref, rtol=1e-5, atol=1e-6), (loss, ref)

    # Case 2: ragged D (= 1000, not a multiple of 128), forced tile_d=256
    #         -> 4 tiles split over the 2-way parallel axis, in-kernel masking.
    y_s = jax.random.normal(k3, (2, 4, 10, 25), dtype=jnp.float32)
    y_t = jax.random.normal(k4, (2, 4, 10, 25), dtype=jnp.float32)
    loss2 = cosine_loss(y_s, y_t, tile_d=256)
    jax.block_until_ready(loss2)
    ref2 = _reference_loss(y_s, y_t)
    assert loss2.shape == (1,), f"unexpected shape {loss2.shape}"
    assert jnp.allclose(loss2, ref2, rtol=1e-5, atol=1e-6), (loss2, ref2)

    # Case 3: ragged D with auto tiling -> single (B, D) tile, no padding at all.
    loss3 = cosine_loss(y_s, y_t)
    jax.block_until_ready(loss3)
    assert jnp.allclose(loss3, ref2, rtol=1e-5, atol=1e-6), (loss3, ref2)

    # Case 4: many small tiles (tile_d=128 -> 8 tiles, 4 per core) exercising the
    #         3-deep input buffering path plus masking of the ragged tail.
    loss4 = cosine_loss(y_s, y_t, tile_d=128)
    jax.block_until_ready(loss4)
    assert jnp.allclose(loss4, ref2, rtol=1e-5, atol=1e-6), (loss4, ref2)

    print("KERNEL_OK")
</pallas_src>

<mosaic_0001>
module attributes {stable_mosaic.version = 11 : i64} {
  func.func @_cosine_gram_kernel(%arg0: i32, %arg1: i32, %arg2: memref<2x1024xf32, #tpu.memory_space<vmem>>, %arg3: memref<2x1024xf32, #tpu.memory_space<vmem>>, %arg4: memref<1x2x2xf32, #tpu.memory_space<vmem>>, %arg5: memref<1x2x2xf32, #tpu.memory_space<vmem>>, %arg6: memref<2x2xf32, #tpu.memory_space<vmem>>, %arg7: memref<2x2xf32, #tpu.memory_space<vmem>>) attributes {dimension_semantics = [#tpu.dimension_semantics<parallel>, #tpu.dimension_semantics<arbitrary>], iteration_bounds = array<i64: 1, 1>, scalar_prefetch = 0 : i64, scratch_operands = 2 : i64, tpu.core_type = #tpu.core_type<tc>, window_params = [{transform_indices = @transform_0, window_bounds = array<i64: 2, 1024>}, {transform_indices = @transform_1, window_bounds = array<i64: 2, 1024>}, {transform_indices = @transform_2, window_bounds = array<i64: 1, 2, 2>}, {transform_indices = @transform_3, window_bounds = array<i64: 1, 2, 2>}]} {
    %c0_i32 = arith.constant 0 : i32
    %0 = arith.cmpi eq, %arg1, %c0_i32 : i32
    %1 = arith.extui %0 : i1 to i32
    %c0_i32_0 = arith.constant 0 : i32
    %2 = arith.cmpi ne, %1, %c0_i32_0 : i32
    scf.if %2 {
      %cst_15 = arith.constant 0.000000e+00 : f32
      %16 = vector.broadcast %cst_15 : f32 to vector<2x2xf32>
      %c0_16 = arith.constant 0 : index
      %c0_17 = arith.constant 0 : index
      %17 = vector.load %arg6[%c0_16, %c0_17] : memref<2x2xf32, #tpu.memory_space<vmem>>, vector<2x2xf32>
      tpu.vector_store %arg6[%c0_16, %c0_17], %16 {strides = array<i32>} : memref<2x2xf32, #tpu.memory_space<vmem>>, vector<2x2xf32>,
      %cst_18 = arith.constant 0.000000e+00 : f32
      %18 = vector.broadcast %cst_18 : f32 to vector<2x2xf32>
      %c0_19 = arith.constant 0 : index
      %c0_20 = arith.constant 0 : index
      %19 = vector.load %arg7[%c0_19, %c0_20] : memref<2x2xf32, #tpu.memory_space<vmem>>, vector<2x2xf32>
      tpu.vector_store %arg7[%c0_19, %c0_20], %18 {strides = array<i32>} : memref<2x2xf32, #tpu.memory_space<vmem>>, vector<2x2xf32>,
    } else {
    }
    %c0 = arith.constant 0 : index
    %c0_1 = arith.constant 0 : index
    %3 = vector.load %arg2[%c0, %c0_1] : memref<2x1024xf32, #tpu.memory_space<vmem>>, vector<2x1024xf32>
    %c0_2 = arith.constant 0 : index
    %c0_3 = arith.constant 0 : index
    %4 = vector.load %arg3[%c0_2, %c0_3] : memref<2x1024xf32, #tpu.memory_space<vmem>>, vector<2x1024xf32>
    %c0_4 = arith.constant 0 : index
    %c0_5 = arith.constant 0 : index
    %5 = vector.load %arg6[%c0_4, %c0_5] : memref<2x2xf32, #tpu.memory_space<vmem>>, vector<2x2xf32>
    %cst = arith.constant dense<0.000000e+00> : vector<2x2xf32>
    %6 = tpu.matmul %3, %3, %cst {dimension_numbers = #tpu.dot_dimension_numbers<[1], [1], [0], [0], [0, 0, 1, 0], [], []>} : vector<2x1024xf32>, vector<2x1024xf32>, vector<2x2xf32> -> vector<2x2xf32>
    %7 = arith.addf %5, %6 : vector<2x2xf32>
    %c0_6 = arith.constant 0 : index
    %c0_7 = arith.constant 0 : index
    %8 = vector.load %arg6[%c0_6, %c0_7] : memref<2x2xf32, #tpu.memory_space<vmem>>, vector<2x2xf32>
    tpu.vector_store %arg6[%c0_6, %c0_7], %7 {strides = array<i32>} : memref<2x2xf32, #tpu.memory_space<vmem>>, vector<2x2xf32>,
    %c0_8 = arith.constant 0 : index
    %c0_9 = arith.constant 0 : index
    %9 = vector.load %arg7[%c0_8, %c0_9] : memref<2x2xf32, #tpu.memory_space<vmem>>, vector<2x2xf32>
    %cst_10 = arith.constant dense<0.000000e+00> : vector<2x2xf32>
    %10 = tpu.matmul %4, %4, %cst_10 {dimension_numbers = #tpu.dot_dimension_numbers<[1], [1], [0], [0], [0, 0, 1, 0], [], []>} : vector<2x1024xf32>, vector<2x1024xf32>, vector<2x2xf32> -> vector<2x2xf32>
    %11 = arith.addf %9, %10 : vector<2x2xf32>
    %c0_11 = arith.constant 0 : index
    %c0_12 = arith.constant 0 : index
    %12 = vector.load %arg7[%c0_11, %c0_12] : memref<2x2xf32, #tpu.memory_space<vmem>>, vector<2x2xf32>
    tpu.vector_store %arg7[%c0_11, %c0_12], %11 {strides = array<i32>} : memref<2x2xf32, #tpu.memory_space<vmem>>, vector<2x2xf32>,
    %c0_i32_13 = arith.constant 0 : i32
    %13 = arith.cmpi eq, %arg1, %c0_i32_13 : i32
    %14 = arith.extui %13 : i1 to i32
    %c0_i32_14 = arith.constant 0 : i32
    %15 = arith.cmpi ne, %14, %c0_i32_14 : i32
    scf.if %15 {
      %c0_15 = arith.constant 0 : index
      %c0_16 = arith.constant 0 : index
      %16 = vector.load %arg6[%c0_15, %c0_16] : memref<2x2xf32, #tpu.memory_space<vmem>>, vector<2x2xf32>
      %c0_17 = arith.constant 0 : index
      %c0_18 = arith.constant 0 : index
      %c0_19 = arith.constant 0 : index
      %17 = vector.load %arg4[%c0_17, %c0_18, %c0_19] : memref<1x2x2xf32, #tpu.memory_space<vmem>>, vector<1x2x2xf32>
      %18 = vector.shape_cast %17 : vector<1x2x2xf32> to vector<2x2xf32>
      %19 = vector.shape_cast %16 : vector<2x2xf32> to vector<1x2x2xf32>
      tpu.vector_store %arg4[%c0_17, %c0_18, %c0_19], %19 {strides = array<i32>} : memref<1x2x2xf32, #tpu.memory_space<vmem>>, vector<1x2x2xf32>,
      %c0_20 = arith.constant 0 : index
      %c0_21 = arith.constant 0 : index
      %20 = vector.load %arg7[%c0_20, %c0_21] : memref<2x2xf32, #tpu.memory_space<vmem>>, vector<2x2xf32>
      %c0_22 = arith.constant 0 : index
      %c0_23 = arith.constant 0 : index
      %c0_24 = arith.constant 0 : index
      %21 = vector.load %arg5[%c0_22, %c0_23, %c0_24] : memref<1x2x2xf32, #tpu.memory_space<vmem>>, vector<1x2x2xf32>
      %22 = vector.shape_cast %21 : vector<1x2x2xf32> to vector<2x2xf32>
      %23 = vector.shape_cast %20 : vector<2x2xf32> to vector<1x2x2xf32>
      tpu.vector_store %arg5[%c0_22, %c0_23, %c0_24], %23 {strides = array<i32>} : memref<1x2x2xf32, #tpu.memory_space<vmem>>, vector<1x2x2xf32>,
    } else {
    }
    return
  }
  func.func @transform_0(%arg0: i32, %arg1: i32) -> (i32, i32) {
    %c1_i32 = arith.constant 1 : i32
    %0 = arith.muli %arg0, %c1_i32 : i32
    %1 = arith.addi %0, %arg1 : i32
    %c0_i32 = arith.constant 0 : i32
    %c0_i32_0 = arith.constant 0 : i32
    return %c0_i32, %1 : i32, i32
  }
  func.func @transform_1(%arg0: i32, %arg1: i32) -> (i32, i32) {
    %c1_i32 = arith.constant 1 : i32
    %0 = arith.muli %arg0, %c1_i32 : i32
    %1 = arith.addi %0, %arg1 : i32
    %c0_i32 = arith.constant 0 : i32
    %c0_i32_0 = arith.constant 0 : i32
    return %c0_i32, %1 : i32, i32
  }
  func.func @transform_2(%arg0: i32, %arg1: i32) -> (i32, i32, i32) {
    %c0_i32 = arith.constant 0 : i32
    %c0_i32_0 = arith.constant 0 : i32
    %c0_i32_1 = arith.constant 0 : i32
    return %arg0, %c0_i32, %c0_i32_0 : i32, i32, i32
  }
  func.func @transform_3(%arg0: i32, %arg1: i32) -> (i32, i32, i32) {
    %c0_i32 = arith.constant 0 : i32
    %c0_i32_0 = arith.constant 0 : i32
    %c0_i32_1 = arith.constant 0 : i32
    return %arg0, %c0_i32, %c0_i32_0 : i32, i32, i32
  }
}

</mosaic_0001>

<bundles_post_ra>
// kernel: tpu_custom_call.1
= control target key start
LH: loop header
LB: loop body
LE: loop exit
PB: predicated region body
PF: predicated region fallthrough
CT: control target
= control target key end

     0   :  { %9 = vsyncpa [#allocation5], 0  ;;  %s940_s0 = inlined_call_operand.hbm [shape: f32[2,1024], index: 0, kind: input, shape index: {}]   ;;  %s941_s1 = inlined_call_operand.hbm [shape: f32[2,1024], index: 1, kind: input, shape index: {}]   ;;  %s942_s2 = inlined_call_operand.hbm [shape: f32[1,2,2], index: 2, kind: output, shape index: {0}]   ;;  %s943_s3 = inlined_call_operand.hbm [shape: f32[1,2,2], index: 3, kind: output, shape index: {1}]  }
   0x1   :  { %10 = vsyncpa [#allocation8], 0 }
   0x2   :  { %11 = vsyncpa [#allocation6], 0 }
   0x3   :  { %12 = vsyncpa [#allocation11], 0  ;;  %s860_s12 = smov [#allocation4]   ;;  %s861_s14 = smov [#allocation7]  }
   0x4   :  { %s23_s13 = sshll.u32 %s860_s12, 4  ;;  %s37_s15 = sshll.u32 %s861_s14, 4  ;;  %s24_s13 = int_to_ptr.vmem [resolvable:$true] %s23_s13  ;;  %s38_s15 = int_to_ptr.vmem [resolvable:$true] %s37_s15 }
   0x5   :  { %s764_s18 = scalar_lea.hbm %s940_s0, 256 }
   0x6   :  { %p765_p0 = scmp.ne.s32.totalorder %s940_s0, %s764_s18  ;;  %p768_p1 = scmp.lt.u32.totalorder %s764_s18, %s940_s0 }
   0x8   :  { %p770_p2 = pnand %p768_p1, %p765_p0 }
   0xa   :  { %773 = shalt.err (!%p770_p2)
}
   0xb   :  { %s774_s23 = scalar_lea.vmem %s24_s13, 256  ;;  %p779_p4 = scmp.lt.s32.totalorder %s24_s13, %s24_s13 }
   0xc   :  { %p775_p3 = scmp.ne.s32.totalorder %s24_s13, %s774_s23  ;;  %p780_p5 = scmp.lt.s32.totalorder %s774_s23, %s774_s23 }
   0xe   :  { %p781_p6 = por %p780_p5, %p779_p4 }
  0x10   :  { %p782_p7 = pnand %p781_p6, %p775_p3 }
  0x12   :  { %785 = shalt.err (!%p782_p7)
}
  0x13   :  { %26 = dma.hbm_to_vmem [thread:$0]  %s940_s0, 256, %s24_s13, [#allocation5]  }
  0x14   :  { %s786_s28 = scalar_lea.hbm %s941_s1, 256 }
  0x15   :  { %p787_p8 = scmp.ne.s32.totalorder %s941_s1, %s786_s28  ;;  %p790_p9 = scmp.lt.u32.totalorder %s786_s28, %s941_s1 }
  0x17   :  { %p792_p10 = pnand %p790_p9, %p787_p8 }
  0x19   :  { %795 = shalt.err (!%p792_p10)
}
  0x1a   :  { %s796_s6 = scalar_lea.vmem %s38_s15, 256  ;;  %p801_p12 = scmp.lt.s32.totalorder %s38_s15, %s38_s15 }
  0x1b   :  { %p797_p11 = scmp.ne.s32.totalorder %s38_s15, %s796_s6  ;;  %p802_p13 = scmp.lt.s32.totalorder %s796_s6, %s796_s6 }
  0x1d   :  { %p803_p0 = por %p802_p13, %p801_p12 }
  0x1f   :  { %p804_p1 = pnand %p803_p0, %p797_p11 }
  0x21   :  { %807 = shalt.err (!%p804_p1)
}
  0x22   :  { %40 = dma.hbm_to_vmem [thread:$0]  %s941_s1, 256, %s38_s15, [#allocation8]  }
  0x23   :  { %852 = dma.done.wait [#allocation5], 256  }
  0x24   :  { %853 = vsyncadd [#allocation5], 4294967040 }
  0x25   :  { %854 = dma.done.wait [#allocation8], 256  }
  0x26   :  { %855 = vsyncadd [#allocation8], 4294967040  ;;  %v69_v0 = vlaneseq  ;;  %v862_v1 = vmov 1983009808   ;;  %v58_v6 = vld [vmem:[#allocation4] sm:$0xff]  ;;  %v59_v7 = vld [vmem:[#allocation4 + $0x8] sm:$0xff] }
  0x27   :  { %v67_v2 = vunpack.c.l.s4 %v862_v1  ;;  %v60_v8 = vld [vmem:[#allocation7] sm:$0xff]  ;;  %v65_v10 = vcombine.high %v58_v6, %v58_v6  ;;  %v82_v12 = vcombine.high %v59_v7, %v59_v7  ;;  %v61_v13 = vld [vmem:[#allocation7 + $0x8] sm:$0xff]  ;;  %vm55_vm0 = vcmask 9216   ;;  %s864_s1 = smov [#allocation9]  }
  0x28   :  { %v70_v3 = vshrl.u32 %v69_v0, 7  ;;  %v393_v15 = vcombine.high %v60_v8, %v60_v8  ;;  %v410_v20 = vcombine.high %v61_v13, %v61_v13  ;;  %v863_v30 = vmov 0.0   ;;  %s730_s8 = sshll.u32 %s864_s1, 4  ;;  %s731_s8 = int_to_ptr.vmem [resolvable:$true] %s730_s8 }
  0x29   :  { %v68_v4 = vunpack.c.0.s8 %v67_v2  ;;  %56 = vst.msk [vmem:[#allocation2] sm:$0x3] %vm55_vm0, %v863_v30  ;;  %57 = vst.msk [vmem:[#allocation3] sm:$0x3] %vm55_vm0, %v863_v30  ;;  %s808_s9 = scalar_lea.vmem %s731_s8, 32  ;;  %p813_p3 = scmp.lt.s32.totalorder %s731_s8, %s731_s8 }
  0x2a   :  { %p809_p2 = scmp.ne.s32.totalorder %s731_s8, %s808_s9  ;;  %p814_p4 = scmp.lt.s32.totalorder %s808_s9, %s808_s9 }
  0x2b   :  { %v71_v5 = vsub.s32 %v68_v4, %v70_v3 }
  0x2c   :  { %p815_p5 = por %p814_p4, %p813_p3 }
  0x2d   :  { %v72_v9 = vrot.slane %v58_v6, %v71_v5  ;;  %v89_v11 = vrot.slane %v59_v7, %v71_v5  ;;  %v400_v14 = vrot.slane %v60_v8, %v71_v5  ;;  %v79_v17 = vrot.slane %v65_v10, %v71_v5 }
  0x2e   :  { %v96_v19 = vrot.slane %v82_v12, %v71_v5  ;;  %v407_v23 = vrot.slane %v393_v15, %v71_v5  ;;  %v417_v25 = vrot.slane %v61_v13, %v71_v5  ;;  %v424_v27 = vrot.slane %v410_v20, %v71_v5  ;;  %p816_p6 = pnand %p815_p5, %p809_p2 }
  0x2f   :  { %v80_v16 = vcombine.high %v72_v9, %v72_v9  ;;  %v97_v18 = vcombine.high %v89_v11, %v89_v11  ;;  %v81_v21 = vcombine.high %v79_v17, %v79_v17  ;;  %v408_v24 = vcombine.high %v400_v14, %v400_v14 }
  0x30   :  { %v98_v22 = vcombine.high %v96_v19, %v96_v19  ;;  %v409_v26 = vcombine.high %v407_v23, %v407_v23  ;;  %v425_v28 = vcombine.high %v417_v25, %v417_v25  ;;  %v426_v29 = vcombine.high %v424_v27, %v424_v27  ;;  %v62_v39 = vld [vmem:[#allocation2] sm:$0x3]  ;;  %v390_v52 = vld [vmem:[#allocation3] sm:$0x3] }
  0x31   :  { %107 = vmatprep.subr.mxu0 %v80_v16  ;;  %171 = vmatprep.mubr.f32.mxu0 %v80_v16 }
  0x32   :  { %108 = vmatpush1.xpose.msra.mxu0 %v72_v9  ;;  %177 = vmatprep.subr.mxu1 %v81_v21 }
  0x33   :  { %247 = vmatprep.subr.mxu0 %v97_v18  ;;  %178 = vmatpush1.xpose.msra.mxu1 %v79_v17 }
  0x34   :  { %241 = vmatprep.mubr.f32.mxu1 %v81_v21  ;;  %317 = vmatprep.subr.mxu1 %v98_v22 }
  0x35   :  { %172 = vmatmul.mubr.f32.vlgmr.msra.gmra.mrb[0].mxu0 %v72_v9 }
  0x36   :  { %248 = vmatpush1.xpose.msra.mxu0 %v89_v11  ;;  %311 = vmatprep.mubr.f32.mxu0 %v97_v18 }
  0x37   :  { %242 = vmatmul.mubr.f32.vlgmr.msra.gmra.mrb[0].mxu1 %v79_v17  ;;  %435 = vmatprep.subr.mxu0 %v408_v24 }
  0x38   :  { %318 = vmatpush1.xpose.msra.mxu1 %v96_v19  ;;  %381 = vmatprep.mubr.f32.mxu1 %v98_v22 }
  0x39   :  { %312 = vmatmul.mubr.f32.vlgmr.msra.gmra.mrb[2].mxu0 %v89_v11  ;;  %505 = vmatprep.subr.mxu1 %v409_v26 }
  0x3a   :  { %436 = vmatpush1.xpose.msra.mxu0 %v400_v14  ;;  %499 = vmatprep.mubr.f32.mxu0 %v408_v24 }
  0x3b   :  { %382 = vmatmul.mubr.f32.vlgmr.msra.gmra.mrb[2].mxu1 %v96_v19  ;;  %575 = vmatprep.subr.mxu0 %v425_v28 }
  0x3c   :  { %506 = vmatpush1.xpose.msra.mxu1 %v407_v23  ;;  %569 = vmatprep.mubr.f32.mxu1 %v409_v26 }
  0x3d   :  { %500 = vmatmul.mubr.f32.vlgmr.msra.gmra.mrb[4].mxu0 %v400_v14  ;;  %645 = vmatprep.subr.mxu1 %v426_v29 }
  0x3e   :  { %576 = vmatpush1.xpose.msra.mxu0 %v417_v25  ;;  %639 = vmatprep.mubr.f32.mxu0 %v425_v28 }
  0x3f   :  { %570 = vmatmul.mubr.f32.vlgmr.msra.gmra.mrb[4].mxu1 %v407_v23 }
  0x40   :  { %646 = vmatpush1.xpose.msra.mxu1 %v424_v27  ;;  %709 = vmatprep.mubr.f32.mxu1 %v426_v29 }
  0x41   :  { %640 = vmatmul.mubr.f32.vlgmr.msra.gmra.mrb[6].mxu0 %v417_v25 }
  0x43   :  { %710 = vmatmul.mubr.f32.vlgmr.msra.gmra.mrb[6].mxu1 %v424_v27 }
 0x108   :  { %v173_v31 = vpop.f32.mrb[0].mxu0 }
 0x109   :  { %v175_v32 = vpop.f32.mrb[1].mxu0 }
 0x10a   :  { %v243_v33 = vpop.f32.mrb[0].mxu1 }
 0x10b   :  { %v244_v34 = vadd.f32 %v243_v33, %v173_v31  ;;  %v245_v35 = vpop.f32.mrb[1].mxu1 }
 0x10c   :  { %v313_v36 = vpop.f32.mrb[2].mxu0 }
 0x10d   :  { %v314_v37 = vadd.f32 %v313_v36, %v244_v34  ;;  %v315_v38 = vpop.f32.mrb[3].mxu0 }
 0x10e   :  { %v383_v40 = vpop.f32.mrb[2].mxu1 }
 0x10f   :  { %v384_v41 = vadd.f32 %v383_v40, %v314_v37  ;;  %v385_v42 = vpop.f32.mrb[3].mxu1 }
 0x110   :  { %v501_v43 = vpop.f32.mrb[4].mxu0 }
 0x111   :  { %v387_v44 = vadd.f32 %v384_v41, %v62_v39  ;;  %v503_v45 = vpop.f32.mrb[5].mxu0 }
 0x112   :  { %v571_v46 = vpop.f32.mrb[4].mxu1 }
 0x113   :  { %389 = vst.msk [vmem:[#allocation2] sm:$0x3] %vm55_vm0, %v387_v44  ;;  %v572_v47 = vadd.f32 %v571_v46, %v501_v43  ;;  %v573_v48 = vpop.f32.mrb[5].mxu1 }
 0x114   :  { %v641_v49 = vpop.f32.mrb[6].mxu0 }
 0x115   :  { %v642_v50 = vadd.f32 %v641_v49, %v572_v47  ;;  %v643_v51 = vpop.f32.mrb[7].mxu0 }
 0x116   :  { %v711_v53 = vpop.f32.mrb[6].mxu1 }
 0x117   :  { %v712_v54 = vadd.f32 %v711_v53, %v642_v50  ;;  %v713_v55 = vpop.f32.mrb[7].mxu1 }
 0x119   :  { %v715_v56 = vadd.f32 %v712_v54, %v390_v52 }
 0x11a   :  { %v720_v57 = vld [vmem:[#allocation2] sm:$0x3] }
 0x11b   :  { %716 = vst.msk [vmem:[#allocation3] sm:$0x3] %vm55_vm0, %v715_v56  ;;  %721 = vst.msk [vmem:[#allocation9] sm:$0x3] %vm55_vm0, %v720_v57 }
 0x11c   :  { %819 = shalt.err (!%p816_p6)
}
 0x11d   :  { %s820_s12 = scalar_lea.hbm %s942_s2, 32 }
 0x11e   :  { %p821_p7 = scmp.ne.s32.totalorder %s942_s2, %s820_s12  ;;  %p824_p8 = scmp.lt.u32.totalorder %s820_s12, %s942_s2 }
 0x120   :  { %p826_p9 = pnand %p824_p8, %p821_p7 }
 0x122   :  { %829 = shalt.err (!%p826_p9)
}
 0x123   :  { %733 = dma.vmem_to_hbm [thread:$0]  %s731_s8, 32, %s942_s2, [#allocation6]   ;;  %v722_v58 = vld [vmem:[#allocation3] sm:$0x3] }
 0x124   :  { %s865_s19 = smov [#allocation10]   ;;  %723 = vst.msk [vmem:[#allocation10] sm:$0x3] %vm55_vm0, %v722_v58 }
 0x125   :  { %s740_s20 = sshll.u32 %s865_s19, 4  ;;  %s741_s20 = int_to_ptr.vmem [resolvable:$true] %s740_s20 }
 0x126   :  { %s830_s21 = scalar_lea.vmem %s741_s20, 32  ;;  %p835_p11 = scmp.lt.s32.totalorder %s741_s20, %s741_s20 }
 0x127   :  { %p831_p10 = scmp.ne.s32.totalorder %s741_s20, %s830_s21  ;;  %p836_p12 = scmp.lt.s32.totalorder %s830_s21, %s830_s21 }
 0x129   :  { %p837_p13 = por %p836_p12, %p835_p11 }
 0x12b   :  { %p838_p0 = pnand %p837_p13, %p831_p10 }
 0x12d   :  { %841 = shalt.err (!%p838_p0)
}
 0x12e   :  { %s842_s24 = scalar_lea.hbm %s943_s3, 32 }
 0x12f   :  { %p843_p1 = scmp.ne.s32.totalorder %s943_s3, %s842_s24  ;;  %p846_p2 = scmp.lt.u32.totalorder %s842_s24, %s943_s3 }
 0x131   :  { %p848_p3 = pnand %p846_p2, %p843_p1 }
 0x133   :  { %851 = shalt.err (!%p848_p3)
}
 0x134   :  { %743 = dma.vmem_to_hbm [thread:$0]  %s741_s20, 32, %s943_s3, [#allocation11]  }
 0x135   :  { %856 = dma.done.wait [#allocation6], 32  }
 0x136   :  { %857 = vsyncadd [#allocation6], 4294967264 }
 0x137   :  { %858 = dma.done.wait [#allocation11], 32  }
 0x138   :  { %859 = vsyncadd [#allocation11], 4294967264 }
 0x139   :  { %750 = vsyncpa [#allocation5], 1 }
 0x13a   :  { %751 = vsyncpa [#allocation8], 1 }
 0x13b   :  { %752 = vsyncpa [#allocation6], 1 }
 0x13c   :  { %753 = vsyncpa [#allocation11], 1 }

</bundles_post_ra>
